<compile_context>
chip_gen: v7x
topology: tpu7x:2x2x1
jax: 0.10.0
libtpu: 0.0.40
codegen_flags: <defaults>
</compile_context>

<pallas_src>
import functools

import jax
import jax.numpy as jnp
from jax.experimental import pallas as pl
from jax.experimental.pallas import tpu as pltpu


# ----------------------------------------------------------------------------
# Activation selection (mirrors phlower's ActivationSelector for the subset
# that is meaningful inside a TPU kernel).
# ----------------------------------------------------------------------------
def _apply_activation(name: str, x):
    if name == "identity":
        return x
    if name == "relu":
        return jnp.maximum(x, 0.0)
    if name == "tanh":
        return jnp.tanh(x)
    if name == "sigmoid":
        return jax.nn.sigmoid(x)
    raise ValueError(f"unsupported activation: {name}")


def _round_up(x: int, m: int) -> int:
    return ((x + m - 1) // m) * m


def _pick_tile(dim: int, align: int, cap: int) -> tuple[int, int]:
    """Return (tile, padded_dim).

    * dim <= cap: full-dim block (no padding; exempt from (8,128) rule).
    * dim  > cap: pad only to `align`, pick the largest cap-bounded multiple of
      `align` dividing the padded dim; if that is degenerate (awkward prime
      factorization), fall back to the tile minimizing total padding.
    """
    if dim <= cap:
        return dim, dim
    padded = _round_up(dim, align)
    best = align
    for t in range(align, cap + 1, align):
        if padded % t == 0:
            best = t
    if best < min(cap, 128):
        best_waste = None
        for t in range(cap, align - 1, -align):
            waste = _round_up(dim, t) - dim
            if best_waste is None or waste < best_waste:
                best, best_waste = t, waste
    return best, _round_up(dim, best)


# ----------------------------------------------------------------------------
# Kernel.  K is the innermost ("arbitrary") grid axis.  The accumulator is
# either the resident f32 output block itself (f32 outputs) or an f32 VMEM
# scratch (narrower output dtypes); it is zeroed at k == 0 and the activation
# + downcast is applied once on the last K step.
# ----------------------------------------------------------------------------
def _einsum_kernel(a_ref, b_ref, o_ref, *scratch, activation: str,
                   k_axis: int, use_scratch: bool):
    k = pl.program_id(k_axis)
    nk = pl.num_programs(k_axis)
    acc_ref = scratch[0] if use_scratch else o_ref

    @pl.when(k == 0)
    def _zero():
        acc_ref[...] = jnp.zeros_like(acc_ref)

    if len(a_ref.shape) == 2:
        # Squeezed batch dim (bt == 1): canonical 2-D MXU matmul.
        acc_ref[...] += jnp.dot(
            a_ref[...], b_ref[...], preferred_element_type=acc_ref.dtype
        )
    else:
        # bt > 1 batch elements per grid step: batched contraction.
        acc_ref[...] += jnp.einsum(
            "bmk,bkn->bmn",
            a_ref[...],
            b_ref[...],
            preferred_element_type=acc_ref.dtype,
        )

    @pl.when(k == nk - 1)
    def _finalize():
        o_ref[...] = _apply_activation(activation, acc_ref[...]).astype(o_ref.dtype)


def einsum_module_forward(a, b, *, equation="bmk,bkn->bmn", activation="relu"):
    """JAX/Pallas equivalent of Einsum.forward for equation 'bmk,bkn->bmn'."""
    if equation != "bmk,bkn->bmn":
        # TODO(synk): general einsum equations are resolved at config time in
        # phlower; only the batched-matmul instantiation is lowered to Pallas.
        raise NotImplementedError(equation)

    B, M, K = a.shape
    Bb, Kb, N = b.shape
    assert B == Bb and K == Kb

    in_itemsize = jnp.dtype(a.dtype).itemsize
    out_dtype = a.dtype
    out_itemsize = jnp.dtype(out_dtype).itemsize
    use_scratch = out_dtype != jnp.float32  # f32 outputs accumulate in-place

    # ---- generation-aware VMEM budget ------------------------------------
    try:
        vmem_cap = int(pltpu.get_tpu_info().vmem_capacity_bytes)
    except Exception:
        vmem_cap = 64 << 20  # conservative (v7x per-TensorCore VMEM)
    tile_budget = int(vmem_cap * 0.65)  # headroom for compiler scratch etc.

    if vmem_cap >= (96 << 20):           # v5e / v6e (128 MiB physical)
        cap_m, cap_n, cap_k = 512, 512, 2048
    else:                                # v7x (64 MiB physical)
        cap_m, cap_n, cap_k = 512, 512, 1024

    # dtype-aware sublane alignment for M (f32: 8, bf16: 16, int8/fp8: 32).
    m_align = max(8, 32 // in_itemsize)

    tm, M_pad = _pick_tile(M, m_align, cap_m)
    tn, N_pad = _pick_tile(N, 128, cap_n)
    tk, K_pad = _pick_tile(K, 128, cap_k)

    # ---- batches per grid step (amortize ~0.35 us/step for small matmuls) --
    per_batch_bytes = (
        2 * in_itemsize * (tm * tk + tk * tn)   # double-buffered A, B tiles
        + 2 * out_itemsize * tm * tn            # double-buffered output tile
        + (4 * tm * tn if use_scratch else 0)   # f32 accumulator scratch
    )
    bt_cap = max(1, tile_budget // max(per_batch_bytes, 1))
    if bt_cap >= B:
        bt = B
    else:
        bt = bt_cap
        for t in range(bt_cap, 0, -1):          # prefer a divisor of B (less padding)
            if B % t == 0:
                if t * 8 >= bt_cap:
                    bt = t
                break
    B_pad = _round_up(B, bt)

    # ---- zero-pad only where a tile boundary requires it ------------------
    a_p, b_p = a, b
    if (B_pad, M_pad, K_pad) != (B, M, K):
        a_p = jnp.pad(a, ((0, B_pad - B), (0, M_pad - M), (0, K_pad - K)))
    if (B_pad, K_pad, N_pad) != (B, K, N):
        b_p = jnp.pad(b, ((0, B_pad - B), (0, K_pad - K), (0, N_pad - N)))

    b_blocks = B_pad // bt
    m_blocks = M_pad // tm
    n_blocks = N_pad // tn
    k_blocks = K_pad // tk

    if bt == 1:
        bdim = pl.Squeezed()           # kernel refs are 2-D
        acc_shape = (tm, tn)
    else:
        bdim = bt                      # kernel refs are 3-D (bt, ., .)
        acc_shape = (bt, tm, tn)

    if b_blocks == 1:
        # Single batch block: drop the batch grid axis so a real parallel
        # extent leads (better megacore balance on v7x, fewer grid steps).
        grid = (m_blocks, n_blocks, k_blocks)
        k_axis = 2
        in_specs = [
            pl.BlockSpec((bdim, tm, tk), lambda mi, ni, ki: (0, mi, ki)),
            pl.BlockSpec((bdim, tk, tn), lambda mi, ni, ki: (0, ki, ni)),
        ]
        out_spec = pl.BlockSpec((bdim, tm, tn), lambda mi, ni, ki: (0, mi, ni))
    else:
        grid = (b_blocks, m_blocks, n_blocks, k_blocks)
        k_axis = 3
        in_specs = [
            pl.BlockSpec((bdim, tm, tk), lambda bi, mi, ni, ki: (bi, mi, ki)),
            pl.BlockSpec((bdim, tk, tn), lambda bi, mi, ni, ki: (bi, ki, ni)),
        ]
        out_spec = pl.BlockSpec((bdim, tm, tn), lambda bi, mi, ni, ki: (bi, mi, ni))

    scratch_shapes = [pltpu.VMEM(acc_shape, jnp.float32)] if use_scratch else []

    kernel = functools.partial(
        _einsum_kernel, activation=activation, k_axis=k_axis, use_scratch=use_scratch
    )

    # ---- VMEM limit: actual footprint + slack (no double-counted 2x) ------
    tiles_bytes = bt * per_batch_bytes
    vmem_limit = int(min(max(tiles_bytes + (8 << 20), 16 << 20),
                         int(vmem_cap * 0.9)))

    # ---- advisory cost estimate (includes A/B re-read factor) -------------
    flops = 2 * B_pad * M_pad * N_pad * K_pad
    transcendentals = (
        B_pad * M_pad * N_pad if activation in ("tanh", "sigmoid") else 0
    )
    bytes_accessed = (
        in_itemsize * B_pad * M_pad * K_pad * n_blocks   # A re-read per N block
        + in_itemsize * B_pad * K_pad * N_pad * m_blocks # B re-read per M block
        + out_itemsize * B_pad * M_pad * N_pad           # output written once
    )

    dim_sem = ("parallel",) * (len(grid) - 1) + ("arbitrary",)

    out_p = pl.pallas_call(
        kernel,
        out_shape=jax.ShapeDtypeStruct((B_pad, M_pad, N_pad), out_dtype),
        grid_spec=pltpu.PrefetchScalarGridSpec(
            num_scalar_prefetch=0,
            grid=grid,
            in_specs=in_specs,
            out_specs=out_spec,
            scratch_shapes=scratch_shapes,
        ),
        compiler_params=pltpu.CompilerParams(
            dimension_semantics=dim_sem,
            vmem_limit_bytes=vmem_limit,
        ),
        cost_estimate=pl.CostEstimate(
            flops=int(flops),
            transcendentals=int(transcendentals),
            bytes_accessed=int(bytes_accessed),
        ),
    )(a_p, b_p)

    if (B_pad, M_pad, N_pad) != (B, M, N):
        out_p = out_p[:B, :M, :N]
    return out_p


if __name__ == "__main__":
    key = jax.random.PRNGKey(0)
    k1, k2 = jax.random.split(key)

    # Small shapes consistent with the module: batch=2, seq=8, hidden=32, out=16.
    B, M, K, N = 2, 8, 32, 16
    a = jax.random.normal(k1, (B, M, K), dtype=jnp.float32)
    b = jax.random.normal(k2, (B, K, N), dtype=jnp.float32)

    out = einsum_module_forward(a, b, equation="bmk,bkn->bmn", activation="relu")
    out = jax.block_until_ready(out)

    # Reference check against plain JAX einsum + activation.
    ref = jnp.maximum(jnp.einsum("bmk,bkn->bmn", a, b), 0.0)
    assert out.shape == ref.shape
    assert jnp.allclose(out, ref, atol=1e-5, rtol=1e-5), "mismatch vs reference"

    print("KERNEL_OK")
</pallas_src>

<mosaic_0001>
module attributes {stable_mosaic.version = 11 : i64} {
  func.func @_einsum_kernel(%arg0: i32, %arg1: i32, %arg2: i32, %arg3: memref<2x8x32xf32, #tpu.memory_space<vmem>>, %arg4: memref<2x32x16xf32, #tpu.memory_space<vmem>>, %arg5: memref<2x8x16xf32, #tpu.memory_space<vmem>>) attributes {dimension_semantics = [#tpu.dimension_semantics<parallel>, #tpu.dimension_semantics<parallel>, #tpu.dimension_semantics<arbitrary>], iteration_bounds = array<i64: 1, 1, 1>, scalar_prefetch = 0 : i64, scratch_operands = 0 : i64, tpu.core_type = #tpu.core_type<tc>, window_params = [{transform_indices = @transform_0, window_bounds = array<i64: 2, 8, 32>}, {transform_indices = @transform_1, window_bounds = array<i64: 2, 32, 16>}, {transform_indices = @transform_2, window_bounds = array<i64: 2, 8, 16>}]} {
    %c0_i32 = arith.constant 0 : i32
    %0 = arith.cmpi eq, %arg2, %c0_i32 : i32
    %1 = arith.extui %0 : i1 to i32
    %c0_i32_0 = arith.constant 0 : i32
    %2 = arith.cmpi ne, %1, %c0_i32_0 : i32
    scf.if %2 {
      %cst_14 = arith.constant 0.000000e+00 : f32
      %12 = vector.broadcast %cst_14 : f32 to vector<2x8x16xf32>
      %c0_15 = arith.constant 0 : index
      %c0_16 = arith.constant 0 : index
      %c0_17 = arith.constant 0 : index
      %13 = vector.load %arg5[%c0_15, %c0_16, %c0_17] : memref<2x8x16xf32, #tpu.memory_space<vmem>>, vector<2x8x16xf32>
      tpu.vector_store %arg5[%c0_15, %c0_16, %c0_17], %12 {strides = array<i32>} : memref<2x8x16xf32, #tpu.memory_space<vmem>>, vector<2x8x16xf32>,
    } else {
    }
    %c0 = arith.constant 0 : index
    %c0_1 = arith.constant 0 : index
    %c0_2 = arith.constant 0 : index
    %3 = vector.load %arg5[%c0, %c0_1, %c0_2] : memref<2x8x16xf32, #tpu.memory_space<vmem>>, vector<2x8x16xf32>
    %c0_3 = arith.constant 0 : index
    %c0_4 = arith.constant 0 : index
    %c0_5 = arith.constant 0 : index
    %4 = vector.load %arg3[%c0_3, %c0_4, %c0_5] : memref<2x8x32xf32, #tpu.memory_space<vmem>>, vector<2x8x32xf32>
    %c0_6 = arith.constant 0 : index
    %c0_7 = arith.constant 0 : index
    %c0_8 = arith.constant 0 : index
    %5 = vector.load %arg4[%c0_6, %c0_7, %c0_8] : memref<2x32x16xf32, #tpu.memory_space<vmem>>, vector<2x32x16xf32>
    "tpu.trace_start"() <{level = 10 : i32, message = "bmk,bkn->bmn"}> : () -> ()
    %cst = arith.constant dense<0.000000e+00> : vector<2x8x16xf32>
    %6 = tpu.matmul %4, %5, %cst {dimension_numbers = #tpu.dot_dimension_numbers<[2], [1], [1], [2], [0, 0, 0, 1, 1, 2], [0], [0]>} : vector<2x8x32xf32>, vector<2x32x16xf32>, vector<2x8x16xf32> -> vector<2x8x16xf32>
    "tpu.trace_stop"() : () -> ()
    %7 = arith.addf %3, %6 : vector<2x8x16xf32>
    %c0_9 = arith.constant 0 : index
    %c0_10 = arith.constant 0 : index
    %c0_11 = arith.constant 0 : index
    %8 = vector.load %arg5[%c0_9, %c0_10, %c0_11] : memref<2x8x16xf32, #tpu.memory_space<vmem>>, vector<2x8x16xf32>
    tpu.vector_store %arg5[%c0_9, %c0_10, %c0_11], %7 {strides = array<i32>} : memref<2x8x16xf32, #tpu.memory_space<vmem>>, vector<2x8x16xf32>,
    %c0_i32_12 = arith.constant 0 : i32
    %9 = arith.cmpi eq, %arg2, %c0_i32_12 : i32
    %10 = arith.extui %9 : i1 to i32
    %c0_i32_13 = arith.constant 0 : i32
    %11 = arith.cmpi ne, %10, %c0_i32_13 : i32
    scf.if %11 {
      %c0_14 = arith.constant 0 : index
      %c0_15 = arith.constant 0 : index
      %c0_16 = arith.constant 0 : index
      %12 = vector.load %arg5[%c0_14, %c0_15, %c0_16] : memref<2x8x16xf32, #tpu.memory_space<vmem>>, vector<2x8x16xf32>
      %cst_17 = arith.constant 0.000000e+00 : f32
      %13 = vector.broadcast %cst_17 : f32 to vector<2x8x16xf32>
      %14 = arith.maximumf %12, %13 : vector<2x8x16xf32>
      %c0_18 = arith.constant 0 : index
      %c0_19 = arith.constant 0 : index
      %c0_20 = arith.constant 0 : index
      %15 = vector.load %arg5[%c0_18, %c0_19, %c0_20] : memref<2x8x16xf32, #tpu.memory_space<vmem>>, vector<2x8x16xf32>
      tpu.vector_store %arg5[%c0_18, %c0_19, %c0_20], %14 {strides = array<i32>} : memref<2x8x16xf32, #tpu.memory_space<vmem>>, vector<2x8x16xf32>,
    } else {
    }
    return
  }
  func.func @transform_0(%arg0: i32, %arg1: i32, %arg2: i32) -> (i32, i32, i32) {
    %c0_i32 = arith.constant 0 : i32
    %c0_i32_0 = arith.constant 0 : i32
    return %c0_i32, %arg0, %arg2 : i32, i32, i32
  }
  func.func @transform_1(%arg0: i32, %arg1: i32, %arg2: i32) -> (i32, i32, i32) {
    %c0_i32 = arith.constant 0 : i32
    %c0_i32_0 = arith.constant 0 : i32
    return %c0_i32, %arg2, %arg1 : i32, i32, i32
  }
  func.func @transform_2(%arg0: i32, %arg1: i32, %arg2: i32) -> (i32, i32, i32) {
    %c0_i32 = arith.constant 0 : i32
    %c0_i32_0 = arith.constant 0 : i32
    return %c0_i32, %arg0, %arg1 : i32, i32, i32
  }
}

</mosaic_0001>

<bundles_post_ra>
// kernel: tpu_custom_call.1
= control target key start
LH: loop header
LB: loop body
LE: loop exit
PB: predicated region body
PF: predicated region fallthrough
CT: control target
= control target key end

     0   :  { %vm16_vm0 = vcmask 130048   ;;  %v284_v3 = vmov 0.0|0.0   ;;  %v285_v8 = vmov 0.0   ;;  %vm286_vm1 = vmmov 0   ;;  %s353_s0 = inlined_call_operand.vmem [shape: f32[2,8,32], index: 0, kind: input, shape index: {}]   ;;  %s354_s1 = inlined_call_operand.vmem [shape: f32[2,32,16], index: 1, kind: input, shape index: {}]   ;;  %s355_s2 = inlined_call_operand.hbm [shape: f32[2,8,16], index: 2, kind: output, shape index: {}]  }
   0x1   :  { %v23_v0 = vld [vmem:[%s354_s1] sm:$0xff]  ;;  %v24_v1 = vld [vmem:[%s354_s1 + $0x8] sm:$0xff]  ;;  %242 = vmatprep.subr.bf16.mxu0 %v284_v3  ;;  %248 = vmatprep.subr.bf16.mxu1 %v284_v3  ;;  %v25_v6 = vld [vmem:[%s354_s1 + $0x10] sm:$0xff]  ;;  %17 = vst.msk [vmem:[#allocation2] sm:$0xff] %vm16_vm0, %v285_v8 }
   0x2   :  { %v27_v2 = vld [vmem:[%s354_s1 + $0x20] sm:$0xff]  ;;  %v243_v4 = vpack.c.bf16 %v24_v1, %v23_v0  ;;  %v28_v5 = vld [vmem:[%s354_s1 + $0x28] sm:$0xff]  ;;  %v26_v7 = vld [vmem:[%s354_s1 + $0x18] sm:$0xff]  ;;  %18 = vst.msk [vmem:[#allocation2 + $0x8] sm:$0xff] %vm16_vm0, %v285_v8  ;;  %228 = vmatprep.mubr.msk.f32.mxu0 %vm286_vm1, %v285_v8  ;;  %239 = vmatprep.mubr.msk.f32.mxu1 %vm286_vm1, %v285_v8 }
   0x3   :  { %v249_v9 = vpack.c.bf16 %v28_v5, %v27_v2  ;;  %v29_v10 = vld [vmem:[%s354_s1 + $0x30] sm:$0xff]  ;;  %v30_v11 = vld [vmem:[%s354_s1 + $0x38] sm:$0xff]  ;;  %v246_v12 = vpack.c.bf16 %v26_v7, %v25_v6 }
   0x4   :  { %244 = vmatpush3.bf16.msra.mxu0 %v243_v4 }
   0x5   :  { %7 = vsyncpa [#allocation3], 0  ;;  %250 = vmatpush3.bf16.msra.mxu1 %v249_v9  ;;  %245 = vmatprep.subr.bf16.mxu0 %v284_v3  ;;  %v252_v13 = vpack.c.bf16 %v30_v11, %v29_v10  ;;  %v21_v14 = vld [vmem:[%s353_s0] sm:$0xff]  ;;  %vm31_vm2 = vcmask 261120   ;;  %v22_v15 = vld [vmem:[%s353_s0 + $0x8] sm:$0xff]  ;;  %s287_s1 = smov [#allocation2]  }
   0x6   :  { %251 = vmatprep.subr.bf16.mxu1 %v284_v3  ;;  %s197_s29 = sshll.u32 %s287_s1, 4  ;;  %s198_s29 = int_to_ptr.vmem [resolvable:$true] %s197_s29 }
   0x7   :  { %s260_s0 = scalar_lea.vmem %s198_s29, 256  ;;  %p265_p1 = scmp.lt.s32.totalorder %s198_s29, %s198_s29 }
   0x8   :  { %247 = vmatpush3.bf16.msra.mxu0 %v246_v12  ;;  %v19_v16 = vld [vmem:[#allocation2] sm:$0xff]  ;;  %p261_p0 = scmp.ne.s32.totalorder %s198_s29, %s260_s0  ;;  %p266_p2 = scmp.lt.s32.totalorder %s260_s0, %s260_s0 }
   0x9   :  { %253 = vmatpush3.bf16.msra.mxu1 %v252_v13  ;;  %v20_v17 = vld [vmem:[#allocation2 + $0x8] sm:$0xff] }
   0xa   :  { %p267_p3 = por %p266_p2, %p265_p1 }
   0xb   :  { %229 = vmatmul.mubr.msk.f32.vlgmr.msra.gmra.mrb[0].mxu0 %vm31_vm2, %v21_v14 }
   0xc   :  { %240 = vmatmul.mubr.msk.f32.vlgmr.msra.gmra.mrb[0].mxu1 %vm31_vm2, %v22_v15  ;;  %p268_p4 = pnand %p267_p3, %p261_p0 }
  0xde   :  { %v101_v18 = vpop.f32.mrb[0].mxu0 }
  0xdf   :  { %v178_v19 = vadd.f32 %v101_v18, %v19_v16  ;;  %v174_v20 = vpop.f32.mrb[0].mxu1  ;;  %v230_v21 = vpop.f32.mrb[1].mxu0 }
  0xe0   :  { %v179_v22 = vadd.f32 %v174_v20, %v20_v17  ;;  %v241_v23 = vpop.f32.mrb[1].mxu1 }
  0xe1   :  { %181 = vst.msk [vmem:[#allocation2] sm:$0xff] %vm16_vm0, %v178_v19 }
  0xe2   :  { %182 = vst.msk [vmem:[#allocation2 + $0x8] sm:$0xff] %vm16_vm0, %v179_v22 }
  0xe8   :  { %v186_v24 = vld [vmem:[#allocation2] sm:$0xff] }
  0xe9   :  { %v187_v25 = vld [vmem:[#allocation2 + $0x8] sm:$0xff]  ;;  %v188_v26 = vmax.f32 %v186_v24, 0.0 }
  0xea   :  { %v189_v27 = vmax.f32 %v187_v25, 0.0 }
  0xeb   :  { %190 = vst.msk [vmem:[#allocation2] sm:$0xff] %vm16_vm0, %v188_v26 }
  0xec   :  { %191 = vst.msk [vmem:[#allocation2 + $0x8] sm:$0xff] %vm16_vm0, %v189_v27 }
  0xed   :  { %271 = shalt.err (!%p268_p4)
}
  0xee   :  { %s272_s4 = scalar_lea.hbm %s355_s2, 256 }
  0xef   :  { %p273_p5 = scmp.ne.s32.totalorder %s355_s2, %s272_s4  ;;  %p276_p6 = scmp.lt.u32.totalorder %s272_s4, %s355_s2 }
  0xf1   :  { %p278_p7 = pnand %p276_p6, %p273_p5 }
  0xf3   :  { %281 = shalt.err (!%p278_p7)
}
  0xf4   :  { %s288_s9 = smov 128   ;;  %s289_s10 = smov 8  }
  0xf5   :  { %203 = dma.vmem_to_hbm [thread:$0]  %s198_s29, 256, %s355_s2, [#allocation3], %s288_s9, %s288_s9, %s289_s10  }
  0xf6   :  { %282 = dma.done.wait [#allocation3], 256  }
  0xf7   :  { %283 = vsyncadd [#allocation3], 4294967040 }
  0xf8   :  { %207 = vsyncpa [#allocation3], 1 }

</bundles_post_ra>
